<compile_context>
chip_gen: v7x
topology: tpu7x:2x2x1
jax: 0.10.0
libtpu: 0.0.40
codegen_flags: <defaults>
</compile_context>

<pallas_src>
import jax
import jax.numpy as jnp
from jax.experimental import pallas as pl
from jax.experimental.pallas import tpu as pltpu


def _linear_kernel(x_ref, wt_ref, b_ref, o_ref):
    # x_ref: (TB, F) natural layout   wt_ref: (F, H) resident   b_ref: (1, H) f32
    # MXU matmul with f32 accumulation; operands stay in their native dtype.
    acc = jnp.dot(x_ref[...], wt_ref[...], preferred_element_type=jnp.float32)
    acc = acc + b_ref[...]                     # (1, H) broadcast over rows (VPU)
    o_ref[...] = acc.astype(o_ref.dtype)       # (TB, H) contiguous natural store


def pallas_linear(x, w, b, *, tb=4096, small_fallback_elems=1 << 14,
                  cast_to_bf16=False):
    """out = x @ w.T + b  (nn.Linear forward).

    x: (B, F)   input, batch-major (any float dtype)
    w: (H, F)   weight in PyTorch nn.Linear layout
    b: (H,)     bias
    returns (B, H) in x.dtype (f32 accumulation inside the kernel).
    """
    B, F = x.shape
    H, F2 = w.shape
    assert F == F2 and b.shape == (H,)

    # Small-shape fallback: pallas_call dispatch overhead dominates at tiny B.
    if B * F <= small_fallback_elems:
        return (x @ w.T.astype(x.dtype) + b.astype(x.dtype)).astype(x.dtype)

    if cast_to_bf16:
        x = x.astype(jnp.bfloat16)

    w_t = w.T.astype(x.dtype)                  # (F, H) tiny, stays resident in VMEM
    b_row = b.reshape(1, H).astype(jnp.float32)

    # Batch tile: multiple of 8 (sublane) unless it equals the full batch.
    tb_eff = min(int(tb), B)
    n_tiles = pl.cdiv(B, tb_eff)
    # Keep >=2 tiles when the batch allows it so the "parallel" axis can land
    # on both TensorCores (v7x megacore); Pallas masks the ragged final block.
    if n_tiles == 1 and B >= 1024:
        tb_eff = ((pl.cdiv(B, 2) + 7) // 8) * 8
        n_tiles = pl.cdiv(B, tb_eff)

    itemsize = jnp.dtype(x.dtype).itemsize
    cost = pl.CostEstimate(
        flops=2 * B * H * F,
        transcendentals=0,
        bytes_accessed=B * F * itemsize + B * H * itemsize + H * F * itemsize + 4 * H,
    )

    out = pl.pallas_call(
        _linear_kernel,
        out_shape=jax.ShapeDtypeStruct((B, H), x.dtype),
        grid=(n_tiles,),
        in_specs=[
            # x tiles stream along the batch axis (double-buffered pipeline).
            pl.BlockSpec((tb_eff, F), lambda i: (i, 0)),
            # Weight and bias: constant block index -> resident in VMEM.
            pl.BlockSpec((F, H), lambda i: (0, 0)),
            pl.BlockSpec((1, H), lambda i: (0, 0)),
        ],
        out_specs=pl.BlockSpec((tb_eff, H), lambda i: (i, 0)),
        compiler_params=pltpu.CompilerParams(
            # Batch tiles are independent -> shard across TCs on v7x megacore.
            dimension_semantics=("parallel",)),
        cost_estimate=cost,
    )(x, w_t, b_row)
    return out


class ObverterMetaVisualModuleJax:
    """JAX/Pallas equivalent of ObverterMetaVisualModule.forward."""

    def __init__(self, hidden_size=32, dataset_type='meta', in_features=32,
                 meta_vocab_size=13, key=None):
        self.dataset_type = dataset_type
        self.hidden_size = hidden_size
        self.process = False
        in_dim = None
        if dataset_type == 'features' and in_features != hidden_size:
            in_dim = in_features
            self.process = True
        if dataset_type == 'meta' and meta_vocab_size != hidden_size:
            in_dim = meta_vocab_size
            self.process = True
        if self.process:
            # Deterministic init mimicking nn.Linear.reset_parameters
            # (uniform(-1/sqrt(in), 1/sqrt(in)) for weight and bias).
            assert key is not None
            kw, kb = jax.random.split(key)
            bound = 1.0 / jnp.sqrt(jnp.float32(in_dim))
            # Keep PyTorch layout: weight (hidden, in), bias (hidden,).
            self.w = jax.random.uniform(
                kw, (hidden_size, in_dim), jnp.float32, -bound, bound)
            self.b = jax.random.uniform(
                kb, (hidden_size,), jnp.float32, -bound, bound)

    def __call__(self, x):
        if (self.dataset_type in ('features', 'meta')) and self.process:
            x = pallas_linear(x, self.w, self.b)
        assert x.shape[1] == self.hidden_size
        return x


if __name__ == "__main__":
    key = jax.random.PRNGKey(0)
    k_in, k_big, k_mod = jax.random.split(key, 3)

    batch = 8
    meta_vocab_size = 13
    hidden_size = 32

    module = ObverterMetaVisualModuleJax(
        hidden_size=hidden_size, dataset_type='meta',
        meta_vocab_size=meta_vocab_size, key=k_mod)

    # 1) Module forward at the spec's small shape (takes the cheap XLA
    #    fallback path -- pallas_call dispatch would dominate at 8x13).
    x_small = jax.random.normal(k_in, (batch, meta_vocab_size), jnp.float32)
    out_small = jax.block_until_ready(module(x_small))
    ref_small = x_small @ module.w.T + module.b
    assert out_small.shape == (batch, hidden_size)
    assert jnp.allclose(out_small, ref_small, atol=1e-5, rtol=1e-5)

    # 2) Exercise the actual Pallas kernel path with a realistic batch
    #    (B*F above the fallback threshold -> 2 parallel grid tiles).
    big_batch = 2048
    x_big = jax.random.normal(k_big, (big_batch, meta_vocab_size), jnp.float32)
    out_big = jax.block_until_ready(pallas_linear(x_big, module.w, module.b))
    ref_big = x_big @ module.w.T + module.b
    assert out_big.shape == (big_batch, hidden_size)
    assert jnp.allclose(out_big, ref_big, atol=1e-5, rtol=1e-5)

    print("KERNEL_OK")
</pallas_src>

<mosaic_0001>
module attributes {stable_mosaic.version = 11 : i64} {
  func.func @_linear_kernel(%arg0: i32, %arg1: memref<1024x13xf32, #tpu.memory_space<vmem>>, %arg2: memref<13x32xf32, #tpu.memory_space<vmem>>, %arg3: memref<1x32xf32, #tpu.memory_space<vmem>>, %arg4: memref<1024x32xf32, #tpu.memory_space<vmem>>) attributes {dimension_semantics = [#tpu.dimension_semantics<parallel>], iteration_bounds = array<i64: 2>, scalar_prefetch = 0 : i64, scratch_operands = 0 : i64, tpu.core_type = #tpu.core_type<tc>, window_params = [{transform_indices = @transform_0, window_bounds = array<i64: 1024, 13>}, {pipeline_mode = #tpu.pipeline_mode<synchronous>, transform_indices = @transform_1, window_bounds = array<i64: 13, 32>}, {pipeline_mode = #tpu.pipeline_mode<synchronous>, transform_indices = @transform_2, window_bounds = array<i64: 1, 32>}, {transform_indices = @transform_3, window_bounds = array<i64: 1024, 32>}]} {
    %c0 = arith.constant 0 : index
    %c0_0 = arith.constant 0 : index
    %0 = vector.load %arg1[%c0, %c0_0] : memref<1024x13xf32, #tpu.memory_space<vmem>>, vector<1024x13xf32>
    %c0_1 = arith.constant 0 : index
    %c0_2 = arith.constant 0 : index
    %1 = vector.load %arg2[%c0_1, %c0_2] : memref<13x32xf32, #tpu.memory_space<vmem>>, vector<13x32xf32>
    %cst = arith.constant dense<0.000000e+00> : vector<1024x32xf32>
    %2 = tpu.matmul %0, %1, %cst {dimension_numbers = #tpu.dot_dimension_numbers<[1], [0], [0], [1], [0, 0, 1, 1], [], []>} : vector<1024x13xf32>, vector<13x32xf32>, vector<1024x32xf32> -> vector<1024x32xf32>
    %c0_3 = arith.constant 0 : index
    %c0_4 = arith.constant 0 : index
    %3 = vector.load %arg3[%c0_3, %c0_4] : memref<1x32xf32, #tpu.memory_space<vmem>>, vector<1x32xf32>
    %4 = vector.broadcast %3 : vector<1x32xf32> to vector<1024x32xf32>
    %5 = arith.addf %2, %4 : vector<1024x32xf32>
    %c0_5 = arith.constant 0 : index
    %c0_6 = arith.constant 0 : index
    %6 = vector.load %arg4[%c0_5, %c0_6] : memref<1024x32xf32, #tpu.memory_space<vmem>>, vector<1024x32xf32>
    tpu.vector_store %arg4[%c0_5, %c0_6], %5 {strides = array<i32>} : memref<1024x32xf32, #tpu.memory_space<vmem>>, vector<1024x32xf32>,
    return
  }
  func.func @transform_0(%arg0: i32) -> (i32, i32) {
    %c0_i32 = arith.constant 0 : i32
    %c0_i32_0 = arith.constant 0 : i32
    return %arg0, %c0_i32 : i32, i32
  }
  func.func @transform_1(%arg0: i32) -> (i32, i32) {
    %c0_i32 = arith.constant 0 : i32
    %c0_i32_0 = arith.constant 0 : i32
    %c0_i32_1 = arith.constant 0 : i32
    return %c0_i32, %c0_i32_0 : i32, i32
  }
  func.func @transform_2(%arg0: i32) -> (i32, i32) {
    %c0_i32 = arith.constant 0 : i32
    %c0_i32_0 = arith.constant 0 : i32
    %c0_i32_1 = arith.constant 0 : i32
    return %c0_i32, %c0_i32_0 : i32, i32
  }
  func.func @transform_3(%arg0: i32) -> (i32, i32) {
    %c0_i32 = arith.constant 0 : i32
    %c0_i32_0 = arith.constant 0 : i32
    return %arg0, %c0_i32 : i32, i32
  }
}

</mosaic_0001>

<bundles_post_ra>
// kernel: tpu_custom_call.1
= control target key start
LH: loop header
LB: loop body
LE: loop exit
PB: predicated region body
PF: predicated region fallthrough
CT: control target
= control target key end

     0   :  { %s2103_s12 = smov 0   ;;  %s2782_s0 = inlined_call_operand.vmem [shape: f32[2048,13], index: 0, kind: input, shape index: {}]   ;;  %s2783_s1 = inlined_call_operand.vmem [shape: f32[13,32], index: 1, kind: input, shape index: {}]   ;;  %s2784_s2 = inlined_call_operand.vmem [shape: f32[1,32], index: 2, kind: input, shape index: {}]   ;;  %s2785_s3 = inlined_call_operand.vmem [shape: f32[2048,32], index: 3, kind: output, shape index: {}]  }
   0x1 LB: > { %s1590_s13 = sadd.s32 4294967295, %s2080_s12   ;;  %p1594_p0 = scmp.ge.s32.totalorder %s2080_s12, 1  ;;  %s2080_s12 = sphi %s2103_s12, %s13_s12  }
   0x2   : > { %p138_p1 = scmp.lt.s32.totalorder %s2080_s12, 3 }
   0x4   : > { %p139_p2 = pnand %p1594_p0, %p138_p1 }
   0x5   : > { %v302_v0 = vld [vmem:[%s2783_s1] sm:$0xff] (!%p139_p2)  ;;  %v303_v1 = vld [vmem:[%s2783_s1 + $0x8] sm:$0x1f] (!%p139_p2)  ;;  %vm696_vm0 = vcmask (!%p139_p2), 1044480   ;;  %s1595_s18 = sshll.u32 (!%p139_p2), %s1590_s13, 7  ;;  %vm2082_vm1 = vmmov (!%p139_p2), 1  }
   0x6   : > { %142 = sbr.rel (%p139_p2) target bundleno = 359 (0x167), region = 32  ;;  %v2057_v2 = vpack.c.bf16 (!%p139_p2), %v303_v1, %v302_v0  ;;  %vm2058_vm2 = vmpackc.low (!%p139_p2), %vm696_vm0, %vm2082_vm1  ;;  %p163_p3 = scmp.lt.s32.totalorder (!%p139_p2), %s1595_s18, 255  ;;  %vm311_vm3 = vcmask (!%p139_p2), 105472   ;;  %vm1405_vm4 = vcmask (!%p139_p2), 261120  }
   0x8   : > { %2059 = vmatprep.subr.msk.bf16.mxu0 (!%p139_p2), %vm2058_vm2, %v2057_v2  ;;  %2063 = vmatprep.subr.msk.bf16.mxu1 (!%p139_p2), %vm2058_vm2, %v2057_v2 }
   0x9   : > { %2062 = vmatpush3.bf16.msk.msra.mxu0 (!%p139_p2), %vm2058_vm2, %v2057_v2  ;;  %2064 = vmatpush3.bf16.msk.msra.mxu1 (!%p139_p2), %vm2058_vm2, %v2057_v2 }
   0xd   : > { %s2787_s18 = smov (!%p163_p3, %s1595_s18), 255 }
   0xe   : > { %s1596_s19 = sshll.u32 %s2787_s18, 3 }
   0xf   : > { %s2125_s22 = scalar_lea.vmem %s2782_s0, %s1596_s19  ;;  %s2393_s27 = scalar_lea.vmem %s2785_s3, %s1596_s19 }
  0x10   : > { %v174_v3 = vld [vmem:[%s2125_s22] sm:$0xff]  ;;  %v175_v5 = vld [vmem:[%s2125_s22 + $0x8] sm:$0xff]  ;;  %v176_v7 = vld [vmem:[%s2125_s22 + $0x10] sm:$0xff] }
  0x11   : > { %v238_v4 = vld [vmem:[%s2125_s22 + $0x200] sm:$0xff]  ;;  %1865 = vmatprep.mubr.msk.f32.mxu0 %vm311_vm3, %v174_v3  ;;  %v239_v6 = vld [vmem:[%s2125_s22 + $0x208] sm:$0xff]  ;;  %v240_v8 = vld [vmem:[%s2125_s22 + $0x210] sm:$0xff] }
  0x12   : > { %1961 = vmatprep.mubr.msk.f32.mxu1 %vm311_vm3, %v238_v4  ;;  %1866 = vmatmul.mubr.msk.f32.vlgmr.msra.gmra.mrb[0].mxu0 %vm311_vm3, %v175_v5  ;;  %v177_v9 = vld [vmem:[%s2125_s22 + $0x18] sm:$0xff]  ;;  %v178_v11 = vld [vmem:[%s2125_s22 + $0x20] sm:$0xff]  ;;  %v179_v13 = vld [vmem:[%s2125_s22 + $0x28] sm:$0xff] }
  0x13   : > { %1962 = vmatmul.mubr.msk.f32.vlgmr.msra.gmra.mrb[0].mxu1 %vm311_vm3, %v239_v6  ;;  %1868 = vmatprep.mubr.msk.f32.mxu0 %vm311_vm3, %v176_v7  ;;  %v241_v10 = vld [vmem:[%s2125_s22 + $0x218] sm:$0xff]  ;;  %v242_v12 = vld [vmem:[%s2125_s22 + $0x220] sm:$0xff]  ;;  %v243_v14 = vld [vmem:[%s2125_s22 + $0x228] sm:$0xff] }
  0x14   : > { %1964 = vmatprep.mubr.msk.f32.mxu1 %vm311_vm3, %v240_v8  ;;  %v180_v15 = vld [vmem:[%s2125_s22 + $0x30] sm:$0xff]  ;;  %v181_v17 = vld [vmem:[%s2125_s22 + $0x38] sm:$0xff]  ;;  %v182_v19 = vld [vmem:[%s2125_s22 + $0x40] sm:$0xff] }
  0x15   : > { %v244_v16 = vld [vmem:[%s2125_s22 + $0x230] sm:$0xff]  ;;  %v245_v18 = vld [vmem:[%s2125_s22 + $0x238] sm:$0xff]  ;;  %v246_v20 = vld [vmem:[%s2125_s22 + $0x240] sm:$0xff] }
  0x16   : > { %1869 = vmatmul.mubr.msk.f32.gmra.mrb[2].mxu0 %vm311_vm3, %v177_v9  ;;  %v183_v21 = vld [vmem:[%s2125_s22 + $0x48] sm:$0xff]  ;;  %v184_v23 = vld [vmem:[%s2125_s22 + $0x50] sm:$0xff]  ;;  %v185_v25 = vld [vmem:[%s2125_s22 + $0x58] sm:$0xff] }
  0x17   : > { %1965 = vmatmul.mubr.msk.f32.gmra.mrb[2].mxu1 %vm311_vm3, %v241_v10  ;;  %1871 = vmatprep.mubr.msk.f32.mxu0 %vm311_vm3, %v178_v11  ;;  %v247_v22 = vld [vmem:[%s2125_s22 + $0x248] sm:$0xff]  ;;  %v248_v24 = vld [vmem:[%s2125_s22 + $0x250] sm:$0xff]  ;;  %v249_v26 = vld [vmem:[%s2125_s22 + $0x258] sm:$0xff] }
  0x18   : > { %1967 = vmatprep.mubr.msk.f32.mxu1 %vm311_vm3, %v242_v12  ;;  %v186_v27 = vld [vmem:[%s2125_s22 + $0x60] sm:$0xff]  ;;  %v187_v29 = vld [vmem:[%s2125_s22 + $0x68] sm:$0xff]  ;;  %v188_v31 = vld [vmem:[%s2125_s22 + $0x70] sm:$0xff] }
  0x19   : > { %v250_v28 = vld [vmem:[%s2125_s22 + $0x260] sm:$0xff]  ;;  %v251_v30 = vld [vmem:[%s2125_s22 + $0x268] sm:$0xff]  ;;  %v252_v32 = vld [vmem:[%s2125_s22 + $0x270] sm:$0xff] }
  0x1a   : > { %1872 = vmatmul.mubr.msk.f32.gmra.mrb[4].mxu0 %vm311_vm3, %v179_v13  ;;  %v189_v33 = vld [vmem:[%s2125_s22 + $0x78] sm:$0xff]  ;;  %v190_v35 = vld [vmem:[%s2125_s22 + $0x80] sm:$0xff]  ;;  %v191_v37 = vld [vmem:[%s2125_s22 + $0x88] sm:$0xff] }
  0x1b   : > { %1968 = vmatmul.mubr.msk.f32.gmra.mrb[4].mxu1 %vm311_vm3, %v243_v14  ;;  %1874 = vmatprep.mubr.msk.f32.mxu0 %vm311_vm3, %v180_v15  ;;  %v253_v34 = vld [vmem:[%s2125_s22 + $0x278] sm:$0xff]  ;;  %v254_v36 = vld [vmem:[%s2125_s22 + $0x280] sm:$0xff]  ;;  %v255_v38 = vld [vmem:[%s2125_s22 + $0x288] sm:$0xff] }
  0x1c   : > { %1970 = vmatprep.mubr.msk.f32.mxu1 %vm311_vm3, %v244_v16  ;;  %v192_v39 = vld [vmem:[%s2125_s22 + $0x90] sm:$0xff]  ;;  %v193_v41 = vld [vmem:[%s2125_s22 + $0x98] sm:$0xff]  ;;  %v194_v43 = vld [vmem:[%s2125_s22 + $0xa0] sm:$0xff] }
  0x1d   : > { %v256_v40 = vld [vmem:[%s2125_s22 + $0x290] sm:$0xff]  ;;  %v257_v42 = vld [vmem:[%s2125_s22 + $0x298] sm:$0xff]  ;;  %v258_v44 = vld [vmem:[%s2125_s22 + $0x2a0] sm:$0xff] }
  0x1e   : > { %1875 = vmatmul.mubr.msk.f32.gmra.mrb[6].mxu0 %vm311_vm3, %v181_v17  ;;  %v195_v45 = vld [vmem:[%s2125_s22 + $0xa8] sm:$0xff]  ;;  %v196_v47 = vld [vmem:[%s2125_s22 + $0xb0] sm:$0xff]  ;;  %v197_v49 = vld [vmem:[%s2125_s22 + $0xb8] sm:$0xff] }
  0x1f   : > { %1971 = vmatmul.mubr.msk.f32.gmra.mrb[6].mxu1 %vm311_vm3, %v245_v18  ;;  %1877 = vmatprep.mubr.msk.f32.mxu0 %vm311_vm3, %v182_v19  ;;  %v259_v46 = vld [vmem:[%s2125_s22 + $0x2a8] sm:$0xff]  ;;  %v260_v48 = vld [vmem:[%s2125_s22 + $0x2b0] sm:$0xff]  ;;  %v261_v50 = vld [vmem:[%s2125_s22 + $0x2b8] sm:$0xff] }
  0x20   : > { %1973 = vmatprep.mubr.msk.f32.mxu1 %vm311_vm3, %v246_v20  ;;  %v198_v51 = vld [vmem:[%s2125_s22 + $0xc0] sm:$0xff]  ;;  %v199_v53 = vld [vmem:[%s2125_s22 + $0xc8] sm:$0xff]  ;;  %v200_v55 = vld [vmem:[%s2125_s22 + $0xd0] sm:$0xff] }
  0x21   : > { %v262_v52 = vld [vmem:[%s2125_s22 + $0x2c0] sm:$0xff]  ;;  %v263_v54 = vld [vmem:[%s2125_s22 + $0x2c8] sm:$0xff]  ;;  %v264_v56 = vld [vmem:[%s2125_s22 + $0x2d0] sm:$0xff] }
  0x22   : > { %1878 = vmatmul.mubr.msk.f32.gmra.mrb[8].mxu0 %vm311_vm3, %v183_v21  ;;  %v201_v57 = vld [vmem:[%s2125_s22 + $0xd8] sm:$0xff]  ;;  %v202_v59 = vld [vmem:[%s2125_s22 + $0xe0] sm:$0xff]  ;;  %v203_v61 = vld [vmem:[%s2125_s22 + $0xe8] sm:$0xff] }
  0x23   : > { %1974 = vmatmul.mubr.msk.f32.gmra.mrb[8].mxu1 %vm311_vm3, %v247_v22  ;;  %1880 = vmatprep.mubr.msk.f32.mxu0 %vm311_vm3, %v184_v23  ;;  %v265_v58 = vld [vmem:[%s2125_s22 + $0x2d8] sm:$0xff]  ;;  %v266_v60 = vld [vmem:[%s2125_s22 + $0x2e0] sm:$0xff]  ;;  %v267_v62 = vld [vmem:[%s2125_s22 + $0x2e8] sm:$0xff] }
  0x24   : > { %1976 = vmatprep.mubr.msk.f32.mxu1 %vm311_vm3, %v248_v24  ;;  %v204_v63 = vld [vmem:[%s2125_s22 + $0xf0] sm:$0xff]  ;;  %v205_v1 = vld [vmem:[%s2125_s22 + $0xf8] sm:$0xff]  ;;  %v206_v3 = vld [vmem:[%s2125_s22 + $0x100] sm:$0xff] }
  0x25   : > { %v268_v0 = vld [vmem:[%s2125_s22 + $0x2f0] sm:$0xff]  ;;  %v269_v2 = vld [vmem:[%s2125_s22 + $0x2f8] sm:$0xff]  ;;  %v270_v4 = vld [vmem:[%s2125_s22 + $0x300] sm:$0xff] }
  0x26   : > { %1881 = vmatmul.mubr.msk.f32.gmra.mrb[10].mxu0 %vm311_vm3, %v185_v25  ;;  %v207_v5 = vld [vmem:[%s2125_s22 + $0x108] sm:$0xff]  ;;  %v208_v7 = vld [vmem:[%s2125_s22 + $0x110] sm:$0xff]  ;;  %v209_v9 = vld [vmem:[%s2125_s22 + $0x118] sm:$0xff] }
  0x27   : > { %1977 = vmatmul.mubr.msk.f32.gmra.mrb[10].mxu1 %vm311_vm3, %v249_v26  ;;  %1883 = vmatprep.mubr.msk.f32.mxu0 %vm311_vm3, %v186_v27  ;;  %v271_v6 = vld [vmem:[%s2125_s22 + $0x308] sm:$0xff]  ;;  %v272_v8 = vld [vmem:[%s2125_s22 + $0x310] sm:$0xff]  ;;  %v273_v10 = vld [vmem:[%s2125_s22 + $0x318] sm:$0xff] }
  0x28   : > { %1979 = vmatprep.mubr.msk.f32.mxu1 %vm311_vm3, %v250_v28  ;;  %v210_v11 = vld [vmem:[%s2125_s22 + $0x120] sm:$0xff]  ;;  %v211_v13 = vld [vmem:[%s2125_s22 + $0x128] sm:$0xff]  ;;  %v212_v15 = vld [vmem:[%s2125_s22 + $0x130] sm:$0xff] }
  0x29   : > { %v274_v12 = vld [vmem:[%s2125_s22 + $0x320] sm:$0xff]  ;;  %v275_v14 = vld [vmem:[%s2125_s22 + $0x328] sm:$0xff]  ;;  %v276_v16 = vld [vmem:[%s2125_s22 + $0x330] sm:$0xff] }
  0x2a   : > { %1884 = vmatmul.mubr.msk.f32.gmra.mrb[12].mxu0 %vm311_vm3, %v187_v29  ;;  %v213_v17 = vld [vmem:[%s2125_s22 + $0x138] sm:$0xff]  ;;  %v214_v19 = vld [vmem:[%s2125_s22 + $0x140] sm:$0xff]  ;;  %v215_v21 = vld [vmem:[%s2125_s22 + $0x148] sm:$0xff] }
  0x2b   : > { %1980 = vmatmul.mubr.msk.f32.gmra.mrb[12].mxu1 %vm311_vm3, %v251_v30  ;;  %1886 = vmatprep.mubr.msk.f32.mxu0 %vm311_vm3, %v188_v31  ;;  %v277_v18 = vld [vmem:[%s2125_s22 + $0x338] sm:$0xff]  ;;  %v278_v20 = vld [vmem:[%s2125_s22 + $0x340] sm:$0xff]  ;;  %v279_v22 = vld [vmem:[%s2125_s22 + $0x348] sm:$0xff] }
  0x2c   : > { %1982 = vmatprep.mubr.msk.f32.mxu1 %vm311_vm3, %v252_v32  ;;  %v216_v23 = vld [vmem:[%s2125_s22 + $0x150] sm:$0xff]  ;;  %v217_v25 = vld [vmem:[%s2125_s22 + $0x158] sm:$0xff]  ;;  %v218_v27 = vld [vmem:[%s2125_s22 + $0x160] sm:$0xff] }
  0x2d   : > { %v280_v24 = vld [vmem:[%s2125_s22 + $0x350] sm:$0xff]  ;;  %v281_v26 = vld [vmem:[%s2125_s22 + $0x358] sm:$0xff]  ;;  %v282_v28 = vld [vmem:[%s2125_s22 + $0x360] sm:$0xff] }
  0x2e   : > { %1887 = vmatmul.mubr.msk.f32.gmra.mrb[14].mxu0 %vm311_vm3, %v189_v33  ;;  %v219_v29 = vld [vmem:[%s2125_s22 + $0x168] sm:$0xff]  ;;  %v220_v31 = vld [vmem:[%s2125_s22 + $0x170] sm:$0xff]  ;;  %v221_v33 = vld [vmem:[%s2125_s22 + $0x178] sm:$0xff] }
  0x2f   : > { %1983 = vmatmul.mubr.msk.f32.gmra.mrb[14].mxu1 %vm311_vm3, %v253_v34  ;;  %1889 = vmatprep.mubr.msk.f32.mxu0 %vm311_vm3, %v190_v35  ;;  %v283_v30 = vld [vmem:[%s2125_s22 + $0x368] sm:$0xff]  ;;  %v284_v32 = vld [vmem:[%s2125_s22 + $0x370] sm:$0xff]  ;;  %v285_v34 = vld [vmem:[%s2125_s22 + $0x378] sm:$0xff] }
  0x30   : > { %1985 = vmatprep.mubr.msk.f32.mxu1 %vm311_vm3, %v254_v36  ;;  %v222_v35 = vld [vmem:[%s2125_s22 + $0x180] sm:$0xff] }
  0x31   : > { %v286_v36 = vld [vmem:[%s2125_s22 + $0x380] sm:$0xff] }
  0x32   : > { %1890 = vmatmul.mubr.msk.f32.gmra.mrb[16].mxu0 %vm311_vm3, %v191_v37  ;;  %v223_v37 = vld [vmem:[%s2125_s22 + $0x188] sm:$0xff] }
  0x33   : > { %1986 = vmatmul.mubr.msk.f32.gmra.mrb[16].mxu1 %vm311_vm3, %v255_v38  ;;  %1892 = vmatprep.mubr.msk.f32.mxu0 %vm311_vm3, %v192_v39  ;;  %v287_v38 = vld [vmem:[%s2125_s22 + $0x388] sm:$0xff]  ;;  %v224_v39 = vld [vmem:[%s2125_s22 + $0x190] sm:$0xff] }
  0x34   : > { %1988 = vmatprep.mubr.msk.f32.mxu1 %vm311_vm3, %v256_v40  ;;  %v288_v40 = vld [vmem:[%s2125_s22 + $0x390] sm:$0xff] }
  0x36   : > { %1893 = vmatmul.mubr.msk.f32.gmra.mrb[18].mxu0 %vm311_vm3, %v193_v41  ;;  %v225_v41 = vld [vmem:[%s2125_s22 + $0x198] sm:$0xff] }
  0x37   : > { %1989 = vmatmul.mubr.msk.f32.gmra.mrb[18].mxu1 %vm311_vm3, %v257_v42  ;;  %1895 = vmatprep.mubr.msk.f32.mxu0 %vm311_vm3, %v194_v43  ;;  %v289_v42 = vld [vmem:[%s2125_s22 + $0x398] sm:$0xff]  ;;  %v226_v43 = vld [vmem:[%s2125_s22 + $0x1a0] sm:$0xff] }
  0x38   : > { %1991 = vmatprep.mubr.msk.f32.mxu1 %vm311_vm3, %v258_v44  ;;  %v290_v44 = vld [vmem:[%s2125_s22 + $0x3a0] sm:$0xff] }
  0x3a   : > { %1896 = vmatmul.mubr.msk.f32.gmra.mrb[20].mxu0 %vm311_vm3, %v195_v45  ;;  %v227_v45 = vld [vmem:[%s2125_s22 + $0x1a8] sm:$0xff] }
  0x3b   : > { %1992 = vmatmul.mubr.msk.f32.gmra.mrb[20].mxu1 %vm311_vm3, %v259_v46  ;;  %1898 = vmatprep.mubr.msk.f32.mxu0 %vm311_vm3, %v196_v47  ;;  %v291_v46 = vld [vmem:[%s2125_s22 + $0x3a8] sm:$0xff]  ;;  %v228_v47 = vld [vmem:[%s2125_s22 + $0x1b0] sm:$0xff] }
  0x3c   : > { %1994 = vmatprep.mubr.msk.f32.mxu1 %vm311_vm3, %v260_v48  ;;  %v292_v48 = vld [vmem:[%s2125_s22 + $0x3b0] sm:$0xff] }
  0x3e   : > { %1899 = vmatmul.mubr.msk.f32.gmra.mrb[22].mxu0 %vm311_vm3, %v197_v49  ;;  %v229_v49 = vld [vmem:[%s2125_s22 + $0x1b8] sm:$0xff] }
  0x3f   : > { %1995 = vmatmul.mubr.msk.f32.gmra.mrb[22].mxu1 %vm311_vm3, %v261_v50  ;;  %1901 = vmatprep.mubr.msk.f32.mxu0 %vm311_vm3, %v198_v51  ;;  %v293_v50 = vld [vmem:[%s2125_s22 + $0x3b8] sm:$0xff]  ;;  %v230_v51 = vld [vmem:[%s2125_s22 + $0x1c0] sm:$0xff] }
  0x40   : > { %1997 = vmatprep.mubr.msk.f32.mxu1 %vm311_vm3, %v262_v52  ;;  %v294_v52 = vld [vmem:[%s2125_s22 + $0x3c0] sm:$0xff] }
  0x42   : > { %1902 = vmatmul.mubr.msk.f32.gmra.mrb[24].mxu0 %vm311_vm3, %v199_v53  ;;  %v231_v53 = vld [vmem:[%s2125_s22 + $0x1c8] sm:$0xff] }
  0x43   : > { %1998 = vmatmul.mubr.msk.f32.gmra.mrb[24].mxu1 %vm311_vm3, %v263_v54  ;;  %1904 = vmatprep.mubr.msk.f32.mxu0 %vm311_vm3, %v200_v55  ;;  %v295_v54 = vld [vmem:[%s2125_s22 + $0x3c8] sm:$0xff]  ;;  %v232_v55 = vld [vmem:[%s2125_s22 + $0x1d0] sm:$0xff] }
  0x44   : > { %2000 = vmatprep.mubr.msk.f32.mxu1 %vm311_vm3, %v264_v56  ;;  %v296_v56 = vld [vmem:[%s2125_s22 + $0x3d0] sm:$0xff] }
  0x46   : > { %1905 = vmatmul.mubr.msk.f32.gmra.mrb[26].mxu0 %vm311_vm3, %v201_v57  ;;  %v233_v57 = vld [vmem:[%s2125_s22 + $0x1d8] sm:$0xff] }
  0x47   : > { %2001 = vmatmul.mubr.msk.f32.gmra.mrb[26].mxu1 %vm311_vm3, %v265_v58  ;;  %1907 = vmatprep.mubr.msk.f32.mxu0 %vm311_vm3, %v202_v59  ;;  %v297_v58 = vld [vmem:[%s2125_s22 + $0x3d8] sm:$0xff]  ;;  %v234_v59 = vld [vmem:[%s2125_s22 + $0x1e0] sm:$0xff] }
  0x48   : > { %2003 = vmatprep.mubr.msk.f32.mxu1 %vm311_vm3, %v266_v60  ;;  %v298_v60 = vld [vmem:[%s2125_s22 + $0x3e0] sm:$0xff] }
  0x4a   : > { %1908 = vmatmul.mubr.msk.f32.gmra.mrb[28].mxu0 %vm311_vm3, %v203_v61  ;;  %v235_v61 = vld [vmem:[%s2125_s22 + $0x1e8] sm:$0xff] }
  0x4b   : > { %2004 = vmatmul.mubr.msk.f32.gmra.mrb[28].mxu1 %vm311_vm3, %v267_v62  ;;  %1910 = vmatprep.mubr.msk.f32.mxu0 %vm311_vm3, %v204_v63  ;;  %v299_v62 = vld [vmem:[%s2125_s22 + $0x3e8] sm:$0xff]  ;;  %v236_v63 = vld [vmem:[%s2125_s22 + $0x1f0] sm:$0xff] }
  0x4c   : > { %2006 = vmatprep.mubr.msk.f32.mxu1 %vm311_vm3, %v268_v0  ;;  %v300_v0 = vld [vmem:[%s2125_s22 + $0x3f0] sm:$0xff] }
  0x4e   : > { %1911 = vmatmul.mubr.msk.f32.gmra.mrb[30].mxu0 %vm311_vm3, %v205_v1  ;;  %v237_v1 = vld [vmem:[%s2125_s22 + $0x1f8] sm:$0xff] }
  0x4f   : > { %2007 = vmatmul.mubr.msk.f32.gmra.mrb[30].mxu1 %vm311_vm3, %v269_v2  ;;  %1913 = vmatprep.mubr.msk.f32.mxu0 %vm311_vm3, %v206_v3  ;;  %v301_v2 = vld [vmem:[%s2125_s22 + $0x3f8] sm:$0xff]  ;;  %v2386_v3 = vld [vmem:[%s2784_s2] ss:$0 sm:$0xff] }
  0x50   : > { %2009 = vmatprep.mubr.msk.f32.mxu1 %vm311_vm3, %v270_v4 }
  0x52   : > { %1914 = vmatmul.mubr.msk.f32.gmra.mrb[32].mxu0 %vm311_vm3, %v207_v5 }
  0x53   : > { %2010 = vmatmul.mubr.msk.f32.gmra.mrb[32].mxu1 %vm311_vm3, %v271_v6  ;;  %1916 = vmatprep.mubr.msk.f32.mxu0 %vm311_vm3, %v208_v7 }
  0x54   : > { %2012 = vmatprep.mubr.msk.f32.mxu1 %vm311_vm3, %v272_v8 }
  0x56   : > { %1917 = vmatmul.mubr.msk.f32.gmra.mrb[34].mxu0 %vm311_vm3, %v209_v9 }
  0x57   : > { %2013 = vmatmul.mubr.msk.f32.gmra.mrb[34].mxu1 %vm311_vm3, %v273_v10  ;;  %1919 = vmatprep.mubr.msk.f32.mxu0 %vm311_vm3, %v210_v11 }
  0x58   : > { %2015 = vmatprep.mubr.msk.f32.mxu1 %vm311_vm3, %v274_v12 }
  0x5a   : > { %1920 = vmatmul.mubr.msk.f32.gmra.mrb[36].mxu0 %vm311_vm3, %v211_v13 }
  0x5b   : > { %2016 = vmatmul.mubr.msk.f32.gmra.mrb[36].mxu1 %vm311_vm3, %v275_v14  ;;  %1922 = vmatprep.mubr.msk.f32.mxu0 %vm311_vm3, %v212_v15 }
  0x5c   : > { %2018 = vmatprep.mubr.msk.f32.mxu1 %vm311_vm3, %v276_v16 }
  0x5e   : > { %1923 = vmatmul.mubr.msk.f32.gmra.mrb[38].mxu0 %vm311_vm3, %v213_v17 }
  0x5f   : > { %2019 = vmatmul.mubr.msk.f32.gmra.mrb[38].mxu1 %vm311_vm3, %v277_v18  ;;  %1925 = vmatprep.mubr.msk.f32.mxu0 %vm311_vm3, %v214_v19 }
  0x60   : > { %2021 = vmatprep.mubr.msk.f32.mxu1 %vm311_vm3, %v278_v20 }
  0x62   : > { %1926 = vmatmul.mubr.msk.f32.gmra.mrb[40].mxu0 %vm311_vm3, %v215_v21 }
  0x63   : > { %2022 = vmatmul.mubr.msk.f32.gmra.mrb[40].mxu1 %vm311_vm3, %v279_v22  ;;  %1928 = vmatprep.mubr.msk.f32.mxu0 %vm311_vm3, %v216_v23 }
  0x64   : > { %2024 = vmatprep.mubr.msk.f32.mxu1 %vm311_vm3, %v280_v24 }
  0x66   : > { %1929 = vmatmul.mubr.msk.f32.gmra.mrb[42].mxu0 %vm311_vm3, %v217_v25 }
  0x67   : > { %2025 = vmatmul.mubr.msk.f32.gmra.mrb[42].mxu1 %vm311_vm3, %v281_v26  ;;  %1931 = vmatprep.mubr.msk.f32.mxu0 %vm311_vm3, %v218_v27 }
  0x68   : > { %2027 = vmatprep.mubr.msk.f32.mxu1 %vm311_vm3, %v282_v28 }
  0x6a   : > { %1932 = vmatmul.mubr.msk.f32.gmra.mrb[44].mxu0 %vm311_vm3, %v219_v29 }
  0x6b   : > { %2028 = vmatmul.mubr.msk.f32.gmra.mrb[44].mxu1 %vm311_vm3, %v283_v30  ;;  %1934 = vmatprep.mubr.msk.f32.mxu0 %vm311_vm3, %v220_v31 }
  0x6c   : > { %2030 = vmatprep.mubr.msk.f32.mxu1 %vm311_vm3, %v284_v32 }
  0x6e   : > { %1935 = vmatmul.mubr.msk.f32.gmra.mrb[46].mxu0 %vm311_vm3, %v221_v33 }
  0x6f   : > { %2031 = vmatmul.mubr.msk.f32.gmra.mrb[46].mxu1 %vm311_vm3, %v285_v34  ;;  %1937 = vmatprep.mubr.msk.f32.mxu0 %vm311_vm3, %v222_v35 }
  0x70   : > { %2033 = vmatprep.mubr.msk.f32.mxu1 %vm311_vm3, %v286_v36 }
  0x72   : > { %1938 = vmatmul.mubr.msk.f32.gmra.mrb[48].mxu0 %vm311_vm3, %v223_v37 }
  0x73   : > { %2034 = vmatmul.mubr.msk.f32.gmra.mrb[48].mxu1 %vm311_vm3, %v287_v38  ;;  %1940 = vmatprep.mubr.msk.f32.mxu0 %vm311_vm3, %v224_v39 }
  0x74   : > { %2036 = vmatprep.mubr.msk.f32.mxu1 %vm311_vm3, %v288_v40 }
  0x76   : > { %1941 = vmatmul.mubr.msk.f32.gmra.mrb[50].mxu0 %vm311_vm3, %v225_v41 }
  0x77   : > { %2037 = vmatmul.mubr.msk.f32.gmra.mrb[50].mxu1 %vm311_vm3, %v289_v42  ;;  %1943 = vmatprep.mubr.msk.f32.mxu0 %vm311_vm3, %v226_v43 }
  0x78   : > { %2039 = vmatprep.mubr.msk.f32.mxu1 %vm311_vm3, %v290_v44 }
  0x7a   : > { %1944 = vmatmul.mubr.msk.f32.gmra.mrb[52].mxu0 %vm311_vm3, %v227_v45 }
  0x7b   : > { %2040 = vmatmul.mubr.msk.f32.gmra.mrb[52].mxu1 %vm311_vm3, %v291_v46  ;;  %1946 = vmatprep.mubr.msk.f32.mxu0 %vm311_vm3, %v228_v47 }
  0x7c   : > { %2042 = vmatprep.mubr.msk.f32.mxu1 %vm311_vm3, %v292_v48 }
  0x7e   : > { %1947 = vmatmul.mubr.msk.f32.gmra.mrb[54].mxu0 %vm311_vm3, %v229_v49 }
  0x7f   : > { %2043 = vmatmul.mubr.msk.f32.gmra.mrb[54].mxu1 %vm311_vm3, %v293_v50  ;;  %1949 = vmatprep.mubr.msk.f32.mxu0 %vm311_vm3, %v230_v51 }
  0x80   : > { %2045 = vmatprep.mubr.msk.f32.mxu1 %vm311_vm3, %v294_v52 }
  0x82   : > { %1950 = vmatmul.mubr.msk.f32.gmra.mrb[56].mxu0 %vm311_vm3, %v231_v53 }
  0x83   : > { %2046 = vmatmul.mubr.msk.f32.gmra.mrb[56].mxu1 %vm311_vm3, %v295_v54  ;;  %1952 = vmatprep.mubr.msk.f32.mxu0 %vm311_vm3, %v232_v55 }
  0x84   : > { %2048 = vmatprep.mubr.msk.f32.mxu1 %vm311_vm3, %v296_v56 }
  0x86   : > { %1953 = vmatmul.mubr.msk.f32.gmra.mrb[58].mxu0 %vm311_vm3, %v233_v57 }
  0x87   : > { %2049 = vmatmul.mubr.msk.f32.gmra.mrb[58].mxu1 %vm311_vm3, %v297_v58  ;;  %1955 = vmatprep.mubr.msk.f32.mxu0 %vm311_vm3, %v234_v59 }
  0x88   : > { %2051 = vmatprep.mubr.msk.f32.mxu1 %vm311_vm3, %v298_v60 }
  0x8a   : > { %1956 = vmatmul.mubr.msk.f32.gmra.mrb[60].mxu0 %vm311_vm3, %v235_v61 }
  0x8b   : > { %2052 = vmatmul.mubr.msk.f32.gmra.mrb[60].mxu1 %vm311_vm3, %v299_v62  ;;  %1958 = vmatprep.mubr.msk.f32.mxu0 %vm311_vm3, %v236_v63 }
  0x8c   : > { %2054 = vmatprep.mubr.msk.f32.mxu1 %vm311_vm3, %v300_v0 }
  0x8e   : > { %1959 = vmatmul.mubr.msk.f32.gmra.mrb[62].mxu0 %vm311_vm3, %v237_v1 }
  0x8f   : > { %2055 = vmatmul.mubr.msk.f32.gmra.mrb[62].mxu1 %vm311_vm3, %v301_v2 }
  0xe5   : > { %v1867_v4 = vpop.f32.mrb[0].mxu0 }
  0xe6   : > { %v1963_v5 = vpop.f32.mrb[0].mxu1  ;;  %v772_v6 = vadd.f32 %v1867_v4, %v2386_v3  ;;  %v766_v8 = vpop.f32.mrb[1].mxu0 }
  0xe7   : > { %v1092_v7 = vadd.f32 %v1963_v5, %v2386_v3  ;;  %v1086_v9 = vpop.f32.mrb[1].mxu1  ;;  %v767_v10 = vadd.f32 %v2386_v3, %v766_v8 }
  0xe8   : > { %v1087_v11 = vadd.f32 %v2386_v3, %v1086_v9  ;;  %1407 = vst.msk [vmem:[%s2393_s27 + $0x8] sm:$0xff] %vm1405_vm4, %v772_v6 }
  0xe9   : > { %1471 = vst.msk [vmem:[%s2393_s27 + $0x208] sm:$0xff] %vm1405_vm4, %v1092_v7  ;;  %1406 = vst.msk [vmem:[%s2393_s27] sm:$0xff] %vm1405_vm4, %v767_v10  ;;  %v1870_v12 = vpop.f32.mrb[2].mxu0 }
  0xea   : > { %1470 = vst.msk [vmem:[%s2393_s27 + $0x200] sm:$0xff] %vm1405_vm4, %v1087_v11  ;;  %v1966_v13 = vpop.f32.mrb[2].mxu1  ;;  %v782_v14 = vadd.f32 %v1870_v12, %v2386_v3  ;;  %v776_v16 = vpop.f32.mrb[3].mxu0 }
  0xeb   : > { %v1102_v15 = vadd.f32 %v1966_v13, %v2386_v3  ;;  %v1096_v17 = vpop.f32.mrb[3].mxu1  ;;  %v777_v18 = vadd.f32 %v2386_v3, %v776_v16 }
  0xec   : > { %v1097_v19 = vadd.f32 %v2386_v3, %v1096_v17  ;;  %1409 = vst.msk [vmem:[%s2393_s27 + $0x18] sm:$0xff] %vm1405_vm4, %v782_v14 }
  0xed   : > { %1473 = vst.msk [vmem:[%s2393_s27 + $0x218] sm:$0xff] %vm1405_vm4, %v1102_v15  ;;  %1408 = vst.msk [vmem:[%s2393_s27 + $0x10] sm:$0xff] %vm1405_vm4, %v777_v18  ;;  %v1873_v20 = vpop.f32.mrb[4].mxu0 }
  0xee   : > { %1472 = vst.msk [vmem:[%s2393_s27 + $0x210] sm:$0xff] %vm1405_vm4, %v1097_v19  ;;  %v1969_v21 = vpop.f32.mrb[4].mxu1  ;;  %v792_v22 = vadd.f32 %v1873_v20, %v2386_v3  ;;  %v786_v24 = vpop.f32.mrb[5].mxu0 }
  0xef   : > { %v1112_v23 = vadd.f32 %v1969_v21, %v2386_v3  ;;  %v1106_v25 = vpop.f32.mrb[5].mxu1  ;;  %v787_v26 = vadd.f32 %v2386_v3, %v786_v24 }
  0xf0   : > { %v1107_v27 = vadd.f32 %v2386_v3, %v1106_v25  ;;  %1411 = vst.msk [vmem:[%s2393_s27 + $0x28] sm:$0xff] %vm1405_vm4, %v792_v22 }
  0xf1   : > { %1475 = vst.msk [vmem:[%s2393_s27 + $0x228] sm:$0xff] %vm1405_vm4, %v1112_v23  ;;  %1410 = vst.msk [vmem:[%s2393_s27 + $0x20] sm:$0xff] %vm1405_vm4, %v787_v26  ;;  %v1876_v28 = vpop.f32.mrb[6].mxu0 }
  0xf2   : > { %1474 = vst.msk [vmem:[%s2393_s27 + $0x220] sm:$0xff] %vm1405_vm4, %v1107_v27  ;;  %v1972_v29 = vpop.f32.mrb[6].mxu1  ;;  %v802_v30 = vadd.f32 %v1876_v28, %v2386_v3  ;;  %v796_v32 = vpop.f32.mrb[7].mxu0 }
  0xf3   : > { %v1122_v31 = vadd.f32 %v1972_v29, %v2386_v3  ;;  %v1116_v33 = vpop.f32.mrb[7].mxu1  ;;  %v797_v34 = vadd.f32 %v2386_v3, %v796_v32 }
  0xf4   : > { %v1117_v35 = vadd.f32 %v2386_v3, %v1116_v33  ;;  %1413 = vst.msk [vmem:[%s2393_s27 + $0x38] sm:$0xff] %vm1405_vm4, %v802_v30 }
  0xf5   : > { %1477 = vst.msk [vmem:[%s2393_s27 + $0x238] sm:$0xff] %vm1405_vm4, %v1122_v31  ;;  %1412 = vst.msk [vmem:[%s2393_s27 + $0x30] sm:$0xff] %vm1405_vm4, %v797_v34  ;;  %v1879_v36 = vpop.f32.mrb[8].mxu0 }
  0xf6   : > { %1476 = vst.msk [vmem:[%s2393_s27 + $0x230] sm:$0xff] %vm1405_vm4, %v1117_v35  ;;  %v1975_v37 = vpop.f32.mrb[8].mxu1  ;;  %v812_v38 = vadd.f32 %v1879_v36, %v2386_v3  ;;  %v806_v40 = vpop.f32.mrb[9].mxu0 }
  0xf7   : > { %v1132_v39 = vadd.f32 %v1975_v37, %v2386_v3  ;;  %v1126_v41 = vpop.f32.mrb[9].mxu1  ;;  %v807_v42 = vadd.f32 %v2386_v3, %v806_v40 }
  0xf8   : > { %v1127_v43 = vadd.f32 %v2386_v3, %v1126_v41  ;;  %1415 = vst.msk [vmem:[%s2393_s27 + $0x48] sm:$0xff] %vm1405_vm4, %v812_v38 }
  0xf9   : > { %1479 = vst.msk [vmem:[%s2393_s27 + $0x248] sm:$0xff] %vm1405_vm4, %v1132_v39  ;;  %1414 = vst.msk [vmem:[%s2393_s27 + $0x40] sm:$0xff] %vm1405_vm4, %v807_v42  ;;  %v1882_v44 = vpop.f32.mrb[10].mxu0 }
  0xfa   : > { %1478 = vst.msk [vmem:[%s2393_s27 + $0x240] sm:$0xff] %vm1405_vm4, %v1127_v43  ;;  %v1978_v45 = vpop.f32.mrb[10].mxu1  ;;  %v822_v46 = vadd.f32 %v1882_v44, %v2386_v3  ;;  %v816_v48 = vpop.f32.mrb[11].mxu0 }
  0xfb   : > { %v1142_v47 = vadd.f32 %v1978_v45, %v2386_v3  ;;  %v1136_v49 = vpop.f32.mrb[11].mxu1  ;;  %v817_v50 = vadd.f32 %v2386_v3, %v816_v48 }
  0xfc   : > { %v1137_v51 = vadd.f32 %v2386_v3, %v1136_v49  ;;  %1417 = vst.msk [vmem:[%s2393_s27 + $0x58] sm:$0xff] %vm1405_vm4, %v822_v46 }
  0xfd   : > { %1481 = vst.msk [vmem:[%s2393_s27 + $0x258] sm:$0xff] %vm1405_vm4, %v1142_v47  ;;  %1416 = vst.msk [vmem:[%s2393_s27 + $0x50] sm:$0xff] %vm1405_vm4, %v817_v50  ;;  %v1885_v52 = vpop.f32.mrb[12].mxu0 }
  0xfe   : > { %1480 = vst.msk [vmem:[%s2393_s27 + $0x250] sm:$0xff] %vm1405_vm4, %v1137_v51  ;;  %v1981_v53 = vpop.f32.mrb[12].mxu1  ;;  %v832_v54 = vadd.f32 %v1885_v52, %v2386_v3  ;;  %v826_v56 = vpop.f32.mrb[13].mxu0 }
  0xff   : > { %v1152_v55 = vadd.f32 %v1981_v53, %v2386_v3  ;;  %v1146_v57 = vpop.f32.mrb[13].mxu1  ;;  %v827_v58 = vadd.f32 %v2386_v3, %v826_v56 }
 0x100   : > { %v1147_v59 = vadd.f32 %v2386_v3, %v1146_v57  ;;  %1419 = vst.msk [vmem:[%s2393_s27 + $0x68] sm:$0xff] %vm1405_vm4, %v832_v54 }
 0x101   : > { %1483 = vst.msk [vmem:[%s2393_s27 + $0x268] sm:$0xff] %vm1405_vm4, %v1152_v55  ;;  %1418 = vst.msk [vmem:[%s2393_s27 + $0x60] sm:$0xff] %vm1405_vm4, %v827_v58  ;;  %v1888_v60 = vpop.f32.mrb[14].mxu0 }
 0x102   : > { %1482 = vst.msk [vmem:[%s2393_s27 + $0x260] sm:$0xff] %vm1405_vm4, %v1147_v59  ;;  %v1984_v61 = vpop.f32.mrb[14].mxu1  ;;  %v842_v62 = vadd.f32 %v1888_v60, %v2386_v3  ;;  %v836_v0 = vpop.f32.mrb[15].mxu0 }
 0x103   : > { %v1162_v63 = vadd.f32 %v1984_v61, %v2386_v3  ;;  %v1156_v1 = vpop.f32.mrb[15].mxu1  ;;  %v837_v2 = vadd.f32 %v2386_v3, %v836_v0 }
 0x104   : > { %v1157_v4 = vadd.f32 %v2386_v3, %v1156_v1  ;;  %1421 = vst.msk [vmem:[%s2393_s27 + $0x78] sm:$0xff] %vm1405_vm4, %v842_v62 }
 0x105   : > { %1485 = vst.msk [vmem:[%s2393_s27 + $0x278] sm:$0xff] %vm1405_vm4, %v1162_v63  ;;  %1420 = vst.msk [vmem:[%s2393_s27 + $0x70] sm:$0xff] %vm1405_vm4, %v837_v2  ;;  %v1891_v5 = vpop.f32.mrb[16].mxu0 }
 0x106   : > { %1484 = vst.msk [vmem:[%s2393_s27 + $0x270] sm:$0xff] %vm1405_vm4, %v1157_v4  ;;  %v1987_v6 = vpop.f32.mrb[16].mxu1  ;;  %v852_v7 = vadd.f32 %v1891_v5, %v2386_v3  ;;  %v846_v9 = vpop.f32.mrb[17].mxu0 }
 0x107   : > { %v1172_v8 = vadd.f32 %v1987_v6, %v2386_v3  ;;  %v1166_v10 = vpop.f32.mrb[17].mxu1  ;;  %v847_v11 = vadd.f32 %v2386_v3, %v846_v9 }
 0x108   : > { %v1167_v12 = vadd.f32 %v2386_v3, %v1166_v10  ;;  %1423 = vst.msk [vmem:[%s2393_s27 + $0x88] sm:$0xff] %vm1405_vm4, %v852_v7 }
 0x109   : > { %1487 = vst.msk [vmem:[%s2393_s27 + $0x288] sm:$0xff] %vm1405_vm4, %v1172_v8  ;;  %1422 = vst.msk [vmem:[%s2393_s27 + $0x80] sm:$0xff] %vm1405_vm4, %v847_v11  ;;  %v1894_v13 = vpop.f32.mrb[18].mxu0 }
 0x10a   : > { %1486 = vst.msk [vmem:[%s2393_s27 + $0x280] sm:$0xff] %vm1405_vm4, %v1167_v12  ;;  %v1990_v14 = vpop.f32.mrb[18].mxu1  ;;  %v862_v15 = vadd.f32 %v1894_v13, %v2386_v3  ;;  %v856_v17 = vpop.f32.mrb[19].mxu0 }
 0x10b   : > { %v1182_v16 = vadd.f32 %v1990_v14, %v2386_v3  ;;  %v1176_v18 = vpop.f32.mrb[19].mxu1  ;;  %v857_v19 = vadd.f32 %v2386_v3, %v856_v17 }
 0x10c   : > { %v1177_v20 = vadd.f32 %v2386_v3, %v1176_v18  ;;  %1425 = vst.msk [vmem:[%s2393_s27 + $0x98] sm:$0xff] %vm1405_vm4, %v862_v15 }
 0x10d   : > { %1489 = vst.msk [vmem:[%s2393_s27 + $0x298] sm:$0xff] %vm1405_vm4, %v1182_v16  ;;  %1424 = vst.msk [vmem:[%s2393_s27 + $0x90] sm:$0xff] %vm1405_vm4, %v857_v19  ;;  %v1897_v21 = vpop.f32.mrb[20].mxu0 }
 0x10e   : > { %1488 = vst.msk [vmem:[%s2393_s27 + $0x290] sm:$0xff] %vm1405_vm4, %v1177_v20  ;;  %v1993_v22 = vpop.f32.mrb[20].mxu1  ;;  %v872_v23 = vadd.f32 %v1897_v21, %v2386_v3  ;;  %v866_v25 = vpop.f32.mrb[21].mxu0 }
 0x10f   : > { %v1192_v24 = vadd.f32 %v1993_v22, %v2386_v3  ;;  %v1186_v26 = vpop.f32.mrb[21].mxu1  ;;  %v867_v27 = vadd.f32 %v2386_v3, %v866_v25 }
 0x110   : > { %v1187_v28 = vadd.f32 %v2386_v3, %v1186_v26  ;;  %1427 = vst.msk [vmem:[%s2393_s27 + $0xa8] sm:$0xff] %vm1405_vm4, %v872_v23 }
 0x111   : > { %1491 = vst.msk [vmem:[%s2393_s27 + $0x2a8] sm:$0xff] %vm1405_vm4, %v1192_v24  ;;  %1426 = vst.msk [vmem:[%s2393_s27 + $0xa0] sm:$0xff] %vm1405_vm4, %v867_v27  ;;  %v1900_v29 = vpop.f32.mrb[22].mxu0 }
 0x112   : > { %1490 = vst.msk [vmem:[%s2393_s27 + $0x2a0] sm:$0xff] %vm1405_vm4, %v1187_v28  ;;  %v1996_v30 = vpop.f32.mrb[22].mxu1  ;;  %v882_v31 = vadd.f32 %v1900_v29, %v2386_v3  ;;  %v876_v33 = vpop.f32.mrb[23].mxu0 }
 0x113   : > { %v1202_v32 = vadd.f32 %v1996_v30, %v2386_v3  ;;  %v1196_v34 = vpop.f32.mrb[23].mxu1  ;;  %v877_v35 = vadd.f32 %v2386_v3, %v876_v33 }
 0x114   : > { %v1197_v36 = vadd.f32 %v2386_v3, %v1196_v34  ;;  %1429 = vst.msk [vmem:[%s2393_s27 + $0xb8] sm:$0xff] %vm1405_vm4, %v882_v31 }
 0x115   : > { %1493 = vst.msk [vmem:[%s2393_s27 + $0x2b8] sm:$0xff] %vm1405_vm4, %v1202_v32  ;;  %1428 = vst.msk [vmem:[%s2393_s27 + $0xb0] sm:$0xff] %vm1405_vm4, %v877_v35  ;;  %v1903_v37 = vpop.f32.mrb[24].mxu0 }
 0x116   : > { %1492 = vst.msk [vmem:[%s2393_s27 + $0x2b0] sm:$0xff] %vm1405_vm4, %v1197_v36  ;;  %v1999_v38 = vpop.f32.mrb[24].mxu1  ;;  %v892_v39 = vadd.f32 %v1903_v37, %v2386_v3  ;;  %v886_v41 = vpop.f32.mrb[25].mxu0 }
 0x117   : > { %v1212_v40 = vadd.f32 %v1999_v38, %v2386_v3  ;;  %v1206_v42 = vpop.f32.mrb[25].mxu1  ;;  %v887_v43 = vadd.f32 %v2386_v3, %v886_v41 }
 0x118   : > { %v1207_v44 = vadd.f32 %v2386_v3, %v1206_v42  ;;  %1431 = vst.msk [vmem:[%s2393_s27 + $0xc8] sm:$0xff] %vm1405_vm4, %v892_v39 }
 0x119   : > { %1495 = vst.msk [vmem:[%s2393_s27 + $0x2c8] sm:$0xff] %vm1405_vm4, %v1212_v40  ;;  %1430 = vst.msk [vmem:[%s2393_s27 + $0xc0] sm:$0xff] %vm1405_vm4, %v887_v43  ;;  %v1906_v45 = vpop.f32.mrb[26].mxu0 }
 0x11a   : > { %1494 = vst.msk [vmem:[%s2393_s27 + $0x2c0] sm:$0xff] %vm1405_vm4, %v1207_v44  ;;  %v2002_v46 = vpop.f32.mrb[26].mxu1  ;;  %v902_v47 = vadd.f32 %v1906_v45, %v2386_v3  ;;  %v896_v49 = vpop.f32.mrb[27].mxu0 }
 0x11b   : > { %v1222_v48 = vadd.f32 %v2002_v46, %v2386_v3  ;;  %v1216_v50 = vpop.f32.mrb[27].mxu1  ;;  %v897_v51 = vadd.f32 %v2386_v3, %v896_v49 }
 0x11c   : > { %v1217_v52 = vadd.f32 %v2386_v3, %v1216_v50  ;;  %1433 = vst.msk [vmem:[%s2393_s27 + $0xd8] sm:$0xff] %vm1405_vm4, %v902_v47 }
 0x11d   : > { %1497 = vst.msk [vmem:[%s2393_s27 + $0x2d8] sm:$0xff] %vm1405_vm4, %v1222_v48  ;;  %1432 = vst.msk [vmem:[%s2393_s27 + $0xd0] sm:$0xff] %vm1405_vm4, %v897_v51  ;;  %v1909_v53 = vpop.f32.mrb[28].mxu0 }
 0x11e   : > { %1496 = vst.msk [vmem:[%s2393_s27 + $0x2d0] sm:$0xff] %vm1405_vm4, %v1217_v52  ;;  %v2005_v54 = vpop.f32.mrb[28].mxu1  ;;  %v912_v55 = vadd.f32 %v1909_v53, %v2386_v3  ;;  %v906_v57 = vpop.f32.mrb[29].mxu0 }
 0x11f   : > { %v1232_v56 = vadd.f32 %v2005_v54, %v2386_v3  ;;  %v1226_v58 = vpop.f32.mrb[29].mxu1  ;;  %v907_v59 = vadd.f32 %v2386_v3, %v906_v57 }
 0x120   : > { %v1227_v60 = vadd.f32 %v2386_v3, %v1226_v58  ;;  %1435 = vst.msk [vmem:[%s2393_s27 + $0xe8] sm:$0xff] %vm1405_vm4, %v912_v55 }
 0x121   : > { %1499 = vst.msk [vmem:[%s2393_s27 + $0x2e8] sm:$0xff] %vm1405_vm4, %v1232_v56  ;;  %1434 = vst.msk [vmem:[%s2393_s27 + $0xe0] sm:$0xff] %vm1405_vm4, %v907_v59  ;;  %v1912_v61 = vpop.f32.mrb[30].mxu0 }
 0x122   : > { %1498 = vst.msk [vmem:[%s2393_s27 + $0x2e0] sm:$0xff] %vm1405_vm4, %v1227_v60  ;;  %v2008_v62 = vpop.f32.mrb[30].mxu1  ;;  %v922_v63 = vadd.f32 %v1912_v61, %v2386_v3  ;;  %v916_v1 = vpop.f32.mrb[31].mxu0 }
 0x123   : > { %v1242_v0 = vadd.f32 %v2008_v62, %v2386_v3  ;;  %v1236_v2 = vpop.f32.mrb[31].mxu1  ;;  %v917_v4 = vadd.f32 %v2386_v3, %v916_v1 }
 0x124   : > { %v1237_v5 = vadd.f32 %v2386_v3, %v1236_v2  ;;  %1437 = vst.msk [vmem:[%s2393_s27 + $0xf8] sm:$0xff] %vm1405_vm4, %v922_v63 }
 0x125   : > { %1501 = vst.msk [vmem:[%s2393_s27 + $0x2f8] sm:$0xff] %vm1405_vm4, %v1242_v0  ;;  %1436 = vst.msk [vmem:[%s2393_s27 + $0xf0] sm:$0xff] %vm1405_vm4, %v917_v4  ;;  %v1915_v6 = vpop.f32.mrb[32].mxu0 }
 0x126   : > { %1500 = vst.msk [vmem:[%s2393_s27 + $0x2f0] sm:$0xff] %vm1405_vm4, %v1237_v5  ;;  %v2011_v7 = vpop.f32.mrb[32].mxu1  ;;  %v932_v8 = vadd.f32 %v1915_v6, %v2386_v3  ;;  %v926_v10 = vpop.f32.mrb[33].mxu0 }
 0x127   : > { %v1252_v9 = vadd.f32 %v2011_v7, %v2386_v3  ;;  %v1246_v11 = vpop.f32.mrb[33].mxu1  ;;  %v927_v12 = vadd.f32 %v2386_v3, %v926_v10 }
 0x128   : > { %v1247_v13 = vadd.f32 %v2386_v3, %v1246_v11  ;;  %1439 = vst.msk [vmem:[%s2393_s27 + $0x108] sm:$0xff] %vm1405_vm4, %v932_v8 }
 0x129   : > { %1503 = vst.msk [vmem:[%s2393_s27 + $0x308] sm:$0xff] %vm1405_vm4, %v1252_v9  ;;  %1438 = vst.msk [vmem:[%s2393_s27 + $0x100] sm:$0xff] %vm1405_vm4, %v927_v12  ;;  %v1918_v14 = vpop.f32.mrb[34].mxu0 }
 0x12a   : > { %1502 = vst.msk [vmem:[%s2393_s27 + $0x300] sm:$0xff] %vm1405_vm4, %v1247_v13  ;;  %v2014_v15 = vpop.f32.mrb[34].mxu1  ;;  %v942_v16 = vadd.f32 %v1918_v14, %v2386_v3  ;;  %v936_v18 = vpop.f32.mrb[35].mxu0 }
 0x12b   : > { %v1262_v17 = vadd.f32 %v2014_v15, %v2386_v3  ;;  %v1256_v19 = vpop.f32.mrb[35].mxu1  ;;  %v937_v20 = vadd.f32 %v2386_v3, %v936_v18 }
 0x12c   : > { %v1257_v21 = vadd.f32 %v2386_v3, %v1256_v19  ;;  %1441 = vst.msk [vmem:[%s2393_s27 + $0x118] sm:$0xff] %vm1405_vm4, %v942_v16 }
 0x12d   : > { %1505 = vst.msk [vmem:[%s2393_s27 + $0x318] sm:$0xff] %vm1405_vm4, %v1262_v17  ;;  %1440 = vst.msk [vmem:[%s2393_s27 + $0x110] sm:$0xff] %vm1405_vm4, %v937_v20  ;;  %v1921_v22 = vpop.f32.mrb[36].mxu0 }
 0x12e   : > { %1504 = vst.msk [vmem:[%s2393_s27 + $0x310] sm:$0xff] %vm1405_vm4, %v1257_v21  ;;  %v2017_v23 = vpop.f32.mrb[36].mxu1  ;;  %v952_v24 = vadd.f32 %v1921_v22, %v2386_v3  ;;  %v946_v26 = vpop.f32.mrb[37].mxu0 }
 0x12f   : > { %v1272_v25 = vadd.f32 %v2017_v23, %v2386_v3  ;;  %v1266_v27 = vpop.f32.mrb[37].mxu1  ;;  %v947_v28 = vadd.f32 %v2386_v3, %v946_v26 }
 0x130   : > { %v1267_v29 = vadd.f32 %v2386_v3, %v1266_v27  ;;  %1443 = vst.msk [vmem:[%s2393_s27 + $0x128] sm:$0xff] %vm1405_vm4, %v952_v24 }
 0x131   : > { %1507 = vst.msk [vmem:[%s2393_s27 + $0x328] sm:$0xff] %vm1405_vm4, %v1272_v25  ;;  %1442 = vst.msk [vmem:[%s2393_s27 + $0x120] sm:$0xff] %vm1405_vm4, %v947_v28  ;;  %v1924_v30 = vpop.f32.mrb[38].mxu0 }
 0x132   : > { %1506 = vst.msk [vmem:[%s2393_s27 + $0x320] sm:$0xff] %vm1405_vm4, %v1267_v29  ;;  %v2020_v31 = vpop.f32.mrb[38].mxu1  ;;  %v962_v32 = vadd.f32 %v1924_v30, %v2386_v3  ;;  %v956_v34 = vpop.f32.mrb[39].mxu0 }
 0x133   : > { %v1282_v33 = vadd.f32 %v2020_v31, %v2386_v3  ;;  %v1276_v35 = vpop.f32.mrb[39].mxu1  ;;  %v957_v36 = vadd.f32 %v2386_v3, %v956_v34 }
 0x134   : > { %v1277_v37 = vadd.f32 %v2386_v3, %v1276_v35  ;;  %1445 = vst.msk [vmem:[%s2393_s27 + $0x138] sm:$0xff] %vm1405_vm4, %v962_v32 }
 0x135   : > { %1509 = vst.msk [vmem:[%s2393_s27 + $0x338] sm:$0xff] %vm1405_vm4, %v1282_v33  ;;  %1444 = vst.msk [vmem:[%s2393_s27 + $0x130] sm:$0xff] %vm1405_vm4, %v957_v36  ;;  %v1927_v38 = vpop.f32.mrb[40].mxu0 }
 0x136   : > { %1508 = vst.msk [vmem:[%s2393_s27 + $0x330] sm:$0xff] %vm1405_vm4, %v1277_v37  ;;  %v2023_v39 = vpop.f32.mrb[40].mxu1  ;;  %v972_v40 = vadd.f32 %v1927_v38, %v2386_v3  ;;  %v966_v42 = vpop.f32.mrb[41].mxu0 }
 0x137   : > { %v1292_v41 = vadd.f32 %v2023_v39, %v2386_v3  ;;  %v1286_v43 = vpop.f32.mrb[41].mxu1  ;;  %v967_v44 = vadd.f32 %v2386_v3, %v966_v42 }
 0x138   : > { %v1287_v45 = vadd.f32 %v2386_v3, %v1286_v43  ;;  %1447 = vst.msk [vmem:[%s2393_s27 + $0x148] sm:$0xff] %vm1405_vm4, %v972_v40 }
 0x139   : > { %1511 = vst.msk [vmem:[%s2393_s27 + $0x348] sm:$0xff] %vm1405_vm4, %v1292_v41  ;;  %1446 = vst.msk [vmem:[%s2393_s27 + $0x140] sm:$0xff] %vm1405_vm4, %v967_v44  ;;  %v1930_v46 = vpop.f32.mrb[42].mxu0 }
 0x13a   : > { %1510 = vst.msk [vmem:[%s2393_s27 + $0x340] sm:$0xff] %vm1405_vm4, %v1287_v45  ;;  %v2026_v47 = vpop.f32.mrb[42].mxu1  ;;  %v982_v48 = vadd.f32 %v1930_v46, %v2386_v3  ;;  %v976_v50 = vpop.f32.mrb[43].mxu0 }
 0x13b   : > { %v1302_v49 = vadd.f32 %v2026_v47, %v2386_v3  ;;  %v1296_v51 = vpop.f32.mrb[43].mxu1  ;;  %v977_v52 = vadd.f32 %v2386_v3, %v976_v50 }
 0x13c   : > { %v1297_v53 = vadd.f32 %v2386_v3, %v1296_v51  ;;  %1449 = vst.msk [vmem:[%s2393_s27 + $0x158] sm:$0xff] %vm1405_vm4, %v982_v48 }
 0x13d   : > { %1513 = vst.msk [vmem:[%s2393_s27 + $0x358] sm:$0xff] %vm1405_vm4, %v1302_v49  ;;  %1448 = vst.msk [vmem:[%s2393_s27 + $0x150] sm:$0xff] %vm1405_vm4, %v977_v52  ;;  %v1933_v54 = vpop.f32.mrb[44].mxu0 }
 0x13e   : > { %1512 = vst.msk [vmem:[%s2393_s27 + $0x350] sm:$0xff] %vm1405_vm4, %v1297_v53  ;;  %v2029_v55 = vpop.f32.mrb[44].mxu1  ;;  %v992_v56 = vadd.f32 %v1933_v54, %v2386_v3  ;;  %v986_v58 = vpop.f32.mrb[45].mxu0 }
 0x13f   : > { %v1312_v57 = vadd.f32 %v2029_v55, %v2386_v3  ;;  %v1306_v59 = vpop.f32.mrb[45].mxu1  ;;  %v987_v60 = vadd.f32 %v2386_v3, %v986_v58 }
 0x140   : > { %v1307_v61 = vadd.f32 %v2386_v3, %v1306_v59  ;;  %1451 = vst.msk [vmem:[%s2393_s27 + $0x168] sm:$0xff] %vm1405_vm4, %v992_v56 }
 0x141   : > { %1515 = vst.msk [vmem:[%s2393_s27 + $0x368] sm:$0xff] %vm1405_vm4, %v1312_v57  ;;  %1450 = vst.msk [vmem:[%s2393_s27 + $0x160] sm:$0xff] %vm1405_vm4, %v987_v60  ;;  %v1936_v62 = vpop.f32.mrb[46].mxu0 }
 0x142   : > { %1514 = vst.msk [vmem:[%s2393_s27 + $0x360] sm:$0xff] %vm1405_vm4, %v1307_v61  ;;  %v2032_v63 = vpop.f32.mrb[46].mxu1  ;;  %v1002_v0 = vadd.f32 %v1936_v62, %v2386_v3  ;;  %v996_v2 = vpop.f32.mrb[47].mxu0 }
 0x143   : > { %v1322_v1 = vadd.f32 %v2032_v63, %v2386_v3  ;;  %v1316_v4 = vpop.f32.mrb[47].mxu1  ;;  %v997_v5 = vadd.f32 %v2386_v3, %v996_v2 }
 0x144   : > { %v1317_v6 = vadd.f32 %v2386_v3, %v1316_v4  ;;  %1453 = vst.msk [vmem:[%s2393_s27 + $0x178] sm:$0xff] %vm1405_vm4, %v1002_v0 }
 0x145   : > { %1517 = vst.msk [vmem:[%s2393_s27 + $0x378] sm:$0xff] %vm1405_vm4, %v1322_v1  ;;  %1452 = vst.msk [vmem:[%s2393_s27 + $0x170] sm:$0xff] %vm1405_vm4, %v997_v5  ;;  %v1939_v7 = vpop.f32.mrb[48].mxu0 }
 0x146   : > { %1516 = vst.msk [vmem:[%s2393_s27 + $0x370] sm:$0xff] %vm1405_vm4, %v1317_v6  ;;  %v2035_v8 = vpop.f32.mrb[48].mxu1  ;;  %v1012_v9 = vadd.f32 %v1939_v7, %v2386_v3  ;;  %v1006_v11 = vpop.f32.mrb[49].mxu0 }
 0x147   : > { %v1332_v10 = vadd.f32 %v2035_v8, %v2386_v3  ;;  %v1326_v12 = vpop.f32.mrb[49].mxu1  ;;  %v1007_v13 = vadd.f32 %v2386_v3, %v1006_v11 }
 0x148   : > { %v1327_v14 = vadd.f32 %v2386_v3, %v1326_v12  ;;  %1455 = vst.msk [vmem:[%s2393_s27 + $0x188] sm:$0xff] %vm1405_vm4, %v1012_v9 }
 0x149   : > { %1519 = vst.msk [vmem:[%s2393_s27 + $0x388] sm:$0xff] %vm1405_vm4, %v1332_v10  ;;  %1454 = vst.msk [vmem:[%s2393_s27 + $0x180] sm:$0xff] %vm1405_vm4, %v1007_v13  ;;  %v1942_v15 = vpop.f32.mrb[50].mxu0 }
 0x14a   : > { %1518 = vst.msk [vmem:[%s2393_s27 + $0x380] sm:$0xff] %vm1405_vm4, %v1327_v14  ;;  %v2038_v16 = vpop.f32.mrb[50].mxu1  ;;  %v1022_v17 = vadd.f32 %v1942_v15, %v2386_v3  ;;  %v1016_v19 = vpop.f32.mrb[51].mxu0 }
 0x14b   : > { %v1342_v18 = vadd.f32 %v2038_v16, %v2386_v3  ;;  %v1336_v20 = vpop.f32.mrb[51].mxu1  ;;  %v1017_v21 = vadd.f32 %v2386_v3, %v1016_v19 }
 0x14c   : > { %v1337_v22 = vadd.f32 %v2386_v3, %v1336_v20  ;;  %1457 = vst.msk [vmem:[%s2393_s27 + $0x198] sm:$0xff] %vm1405_vm4, %v1022_v17 }
 0x14d   : > { %1521 = vst.msk [vmem:[%s2393_s27 + $0x398] sm:$0xff] %vm1405_vm4, %v1342_v18  ;;  %1456 = vst.msk [vmem:[%s2393_s27 + $0x190] sm:$0xff] %vm1405_vm4, %v1017_v21  ;;  %v1945_v23 = vpop.f32.mrb[52].mxu0 }
 0x14e   : > { %1520 = vst.msk [vmem:[%s2393_s27 + $0x390] sm:$0xff] %vm1405_vm4, %v1337_v22  ;;  %v2041_v24 = vpop.f32.mrb[52].mxu1  ;;  %v1032_v25 = vadd.f32 %v1945_v23, %v2386_v3  ;;  %v1026_v27 = vpop.f32.mrb[53].mxu0 }
 0x14f   : > { %v1352_v26 = vadd.f32 %v2041_v24, %v2386_v3  ;;  %v1346_v28 = vpop.f32.mrb[53].mxu1  ;;  %v1027_v29 = vadd.f32 %v2386_v3, %v1026_v27 }
 0x150   : > { %v1347_v30 = vadd.f32 %v2386_v3, %v1346_v28  ;;  %1459 = vst.msk [vmem:[%s2393_s27 + $0x1a8] sm:$0xff] %vm1405_vm4, %v1032_v25 }
 0x151   : > { %1523 = vst.msk [vmem:[%s2393_s27 + $0x3a8] sm:$0xff] %vm1405_vm4, %v1352_v26  ;;  %1458 = vst.msk [vmem:[%s2393_s27 + $0x1a0] sm:$0xff] %vm1405_vm4, %v1027_v29  ;;  %v1948_v31 = vpop.f32.mrb[54].mxu0 }
 0x152   : > { %1522 = vst.msk [vmem:[%s2393_s27 + $0x3a0] sm:$0xff] %vm1405_vm4, %v1347_v30  ;;  %v2044_v32 = vpop.f32.mrb[54].mxu1  ;;  %v1042_v33 = vadd.f32 %v1948_v31, %v2386_v3  ;;  %v1036_v35 = vpop.f32.mrb[55].mxu0 }
 0x153   : > { %v1362_v34 = vadd.f32 %v2044_v32, %v2386_v3  ;;  %v1356_v36 = vpop.f32.mrb[55].mxu1  ;;  %v1037_v37 = vadd.f32 %v2386_v3, %v1036_v35 }
 0x154   : > { %v1357_v38 = vadd.f32 %v2386_v3, %v1356_v36  ;;  %1461 = vst.msk [vmem:[%s2393_s27 + $0x1b8] sm:$0xff] %vm1405_vm4, %v1042_v33 }
 0x155   : > { %1525 = vst.msk [vmem:[%s2393_s27 + $0x3b8] sm:$0xff] %vm1405_vm4, %v1362_v34  ;;  %1460 = vst.msk [vmem:[%s2393_s27 + $0x1b0] sm:$0xff] %vm1405_vm4, %v1037_v37  ;;  %v1951_v39 = vpop.f32.mrb[56].mxu0 }
 0x156   : > { %1524 = vst.msk [vmem:[%s2393_s27 + $0x3b0] sm:$0xff] %vm1405_vm4, %v1357_v38  ;;  %v2047_v40 = vpop.f32.mrb[56].mxu1  ;;  %v1052_v41 = vadd.f32 %v1951_v39, %v2386_v3  ;;  %v1046_v43 = vpop.f32.mrb[57].mxu0 }
 0x157   : > { %v1372_v42 = vadd.f32 %v2047_v40, %v2386_v3  ;;  %v1366_v44 = vpop.f32.mrb[57].mxu1  ;;  %v1047_v45 = vadd.f32 %v2386_v3, %v1046_v43 }
 0x158   : > { %v1367_v46 = vadd.f32 %v2386_v3, %v1366_v44  ;;  %1463 = vst.msk [vmem:[%s2393_s27 + $0x1c8] sm:$0xff] %vm1405_vm4, %v1052_v41 }
 0x159   : > { %1527 = vst.msk [vmem:[%s2393_s27 + $0x3c8] sm:$0xff] %vm1405_vm4, %v1372_v42  ;;  %1462 = vst.msk [vmem:[%s2393_s27 + $0x1c0] sm:$0xff] %vm1405_vm4, %v1047_v45  ;;  %v1954_v47 = vpop.f32.mrb[58].mxu0 }
 0x15a   : > { %1526 = vst.msk [vmem:[%s2393_s27 + $0x3c0] sm:$0xff] %vm1405_vm4, %v1367_v46  ;;  %v2050_v48 = vpop.f32.mrb[58].mxu1  ;;  %v1062_v49 = vadd.f32 %v1954_v47, %v2386_v3  ;;  %v1056_v51 = vpop.f32.mrb[59].mxu0 }
 0x15b   : > { %v1382_v50 = vadd.f32 %v2050_v48, %v2386_v3  ;;  %v1376_v52 = vpop.f32.mrb[59].mxu1  ;;  %v1057_v53 = vadd.f32 %v2386_v3, %v1056_v51 }
 0x15c   : > { %v1377_v54 = vadd.f32 %v2386_v3, %v1376_v52  ;;  %1465 = vst.msk [vmem:[%s2393_s27 + $0x1d8] sm:$0xff] %vm1405_vm4, %v1062_v49 }
 0x15d   : > { %1529 = vst.msk [vmem:[%s2393_s27 + $0x3d8] sm:$0xff] %vm1405_vm4, %v1382_v50  ;;  %1464 = vst.msk [vmem:[%s2393_s27 + $0x1d0] sm:$0xff] %vm1405_vm4, %v1057_v53  ;;  %v1957_v55 = vpop.f32.mrb[60].mxu0 }
 0x15e   : > { %1528 = vst.msk [vmem:[%s2393_s27 + $0x3d0] sm:$0xff] %vm1405_vm4, %v1377_v54  ;;  %v2053_v56 = vpop.f32.mrb[60].mxu1  ;;  %v1072_v57 = vadd.f32 %v1957_v55, %v2386_v3  ;;  %v1066_v59 = vpop.f32.mrb[61].mxu0 }
 0x15f   : > { %v1392_v58 = vadd.f32 %v2053_v56, %v2386_v3  ;;  %v1386_v60 = vpop.f32.mrb[61].mxu1  ;;  %v1067_v61 = vadd.f32 %v2386_v3, %v1066_v59 }
 0x160   : > { %v1387_v62 = vadd.f32 %v2386_v3, %v1386_v60  ;;  %1467 = vst.msk [vmem:[%s2393_s27 + $0x1e8] sm:$0xff] %vm1405_vm4, %v1072_v57 }
 0x161   : > { %1531 = vst.msk [vmem:[%s2393_s27 + $0x3e8] sm:$0xff] %vm1405_vm4, %v1392_v58  ;;  %1466 = vst.msk [vmem:[%s2393_s27 + $0x1e0] sm:$0xff] %vm1405_vm4, %v1067_v61  ;;  %v1960_v63 = vpop.f32.mrb[62].mxu0 }
 0x162   : > { %1530 = vst.msk [vmem:[%s2393_s27 + $0x3e0] sm:$0xff] %vm1405_vm4, %v1387_v62  ;;  %v2056_v0 = vpop.f32.mrb[62].mxu1  ;;  %v1082_v1 = vadd.f32 %v1960_v63, %v2386_v3  ;;  %v1076_v4 = vpop.f32.mrb[63].mxu0 }
 0x163   : > { %v1402_v2 = vadd.f32 %v2056_v0, %v2386_v3  ;;  %v1396_v5 = vpop.f32.mrb[63].mxu1  ;;  %v1077_v6 = vadd.f32 %v2386_v3, %v1076_v4 }
 0x164   : > { %v1397_v7 = vadd.f32 %v2386_v3, %v1396_v5  ;;  %1469 = vst.msk [vmem:[%s2393_s27 + $0x1f8] sm:$0xff] %vm1405_vm4, %v1082_v1 }
 0x165   : > { %1533 = vst.msk [vmem:[%s2393_s27 + $0x3f8] sm:$0xff] %vm1405_vm4, %v1402_v2  ;;  %1468 = vst.msk [vmem:[%s2393_s27 + $0x1f0] sm:$0xff] %vm1405_vm4, %v1077_v6 }
 0x166   : > { %1532 = vst.msk [vmem:[%s2393_s27 + $0x3f0] sm:$0xff] %vm1405_vm4, %v1397_v7 }
 0x167 PF: > { %s13_s12 = sadd.s32 1, %s2080_s12  }
 0x168   : > { %p10_p4 = scmp.ge.s32.totalorder %s13_s12, 4  }
 0x16a   :  { %12 = sbr.rel (!%p10_p4) target bundleno = 1 (0x1), region = 62 }

</bundles_post_ra>
